<compile_context>
chip_gen: v7x
topology: tpu7x:2x2x1
jax: 0.10.0
libtpu: 0.0.40
codegen_flags: <defaults>
</compile_context>

<pallas_src>
import functools

import jax
import jax.numpy as jnp
from jax import lax
from jax.experimental import pallas as pl
from jax.experimental.pallas import tpu as pltpu

# ----------------------------- config (small) -------------------------------
VOCAB_SIZE = 50      # TODO(synk): real model uses GloVe 6B (400K x 100); here a
                     # small synthetic table — the in-kernel one-hot gather is
                     # only appropriate for tiny vocabs; a big vocab would use a
                     # scalar-prefetch / DMA row gather instead.
EMBED_DIM = 100
HIDDEN_DIM = 32
OUTPUT_DIM = 1
BATCH = 2
SEQ_LEN = 8
NUM_LAYERS = 1       # single-layer LSTM, as in the reference module


# ------------------------------ Pallas kernel -------------------------------
def lstm_fused_kernel(ids_ref,   # (T*Bp, 1) int32, time-major flattened tokens
                      tbl_ref,   # (V, E)    embedding table
                      wih_ref,   # (E, 4H)   input->gates weights (i|f|g|o)
                      whh_ref,   # (H, 4H)   hidden->gates weights (i|f|g|o)
                      b_ref,     # (1, 4H)   b_ih + b_hh combined
                      wfc_ref,   # (1, H)    final linear weight (transposed)
                      bfc_ref,   # (1, O)    final linear bias
                      out_ref,   # (Bp, O)   sigmoid(fc(h_T))
                      *, T, Bp):
    V, _ = tbl_ref.shape
    H = whh_ref.shape[0]

    # ---- fused embedding gather: one-hot (exact 0/1 selectors) @ table -----
    ids = ids_ref[...]                                           # (T*Bp, 1)
    vocab_iota = lax.broadcasted_iota(jnp.int32, (T * Bp, V), 1)
    onehot = (ids == vocab_iota).astype(jnp.float32)             # (T*Bp, V)
    emb = jnp.dot(onehot, tbl_ref[...],
                  preferred_element_type=jnp.float32)            # (T*Bp, E)

    # ---- hoisted input projection + bias: one batched MXU matmul -----------
    xw = (jnp.dot(emb, wih_ref[...], preferred_element_type=jnp.float32)
          + b_ref[...])                                          # (T*Bp, 4H)

    whh = whh_ref[...]                                           # hoisted load

    h = jnp.zeros((Bp, H), jnp.float32)
    c = jnp.zeros((Bp, H), jnp.float32)

    # ---- recurrence: statically unrolled, only the small matmul is serial --
    for t in range(T):
        gates = (xw[t * Bp:(t + 1) * Bp, :]
                 + jnp.dot(h, whh, preferred_element_type=jnp.float32))
        sig = jax.nn.sigmoid(gates)   # full-width (Bp, 4H) EUP pass
        th = jnp.tanh(gates)          # full-width (Bp, 4H) EUP pass
        i_g = sig[:, 0 * H:1 * H]
        f_g = sig[:, 1 * H:2 * H]
        g_g = th[:, 2 * H:3 * H]
        o_g = sig[:, 3 * H:4 * H]
        c = f_g * c + i_g * g_g
        h = o_g * jnp.tanh(c)

    # ---- final fc (O=1): VPU multiply + lane reduce, skip the MXU tail -----
    logits = jnp.sum(h * wfc_ref[...], axis=-1, keepdims=True) + bfc_ref[...]
    out_ref[...] = jax.nn.sigmoid(logits)


# ------------------------------ wrapper --------------------------------------
@jax.jit
def lstm_model_forward(x_tokens, params):
    """Forward pass matching LSTMModel.forward. x_tokens: (B, T) int32."""
    B, T = x_tokens.shape
    Bp = ((B + 7) // 8) * 8                     # pad batch to f32 sublane (8)
    H = params["w_hh"].shape[0]
    O = params["w_fc"].shape[1]

    # Pad batch with token 0 (rows discarded afterwards) and go time-major so
    # timestep t occupies rows [t*Bp, (t+1)*Bp) — aligned sublane blocks.
    ids_pad = jnp.zeros((Bp, T), jnp.int32).at[:B, :].set(x_tokens)
    ids_tm = ids_pad.T.reshape(T * Bp, 1)       # (T*Bp, 1) int32

    kernel = functools.partial(lstm_fused_kernel, T=T, Bp=Bp)
    vmem = pl.BlockSpec(memory_space=pltpu.MemorySpace.VMEM)
    out_pad = pl.pallas_call(
        kernel,
        out_shape=jax.ShapeDtypeStruct((Bp, O), jnp.float32),
        in_specs=[vmem] * 7,
        out_specs=vmem,
    )(ids_tm,
      params["embedding"],
      params["w_ih"],
      params["w_hh"],
      params["b"],
      params["w_fc"].T,                         # (O, H) row for VPU fc reduce
      params["b_fc"])
    return out_pad[:B]


# --------------------------- pure-JAX reference -------------------------------
def lstm_model_reference(x_tokens, params):
    emb = jnp.take(params["embedding"], x_tokens, axis=0)  # (B, T, E)
    B, T, _ = emb.shape
    H = params["w_hh"].shape[0]
    h = jnp.zeros((B, H), jnp.float32)
    c = jnp.zeros((B, H), jnp.float32)
    for t in range(T):
        gates = emb[:, t, :] @ params["w_ih"] + h @ params["w_hh"] + params["b"]
        i_g = jax.nn.sigmoid(gates[:, 0 * H:1 * H])
        f_g = jax.nn.sigmoid(gates[:, 1 * H:2 * H])
        g_g = jnp.tanh(gates[:, 2 * H:3 * H])
        o_g = jax.nn.sigmoid(gates[:, 3 * H:4 * H])
        c = f_g * c + i_g * g_g
        h = o_g * jnp.tanh(c)
    return jax.nn.sigmoid(h @ params["w_fc"] + params["b_fc"])


# ------------------------------ param init ------------------------------------
def init_params(key):
    # TODO(synk): real model loads pretrained GloVe vectors; here the embedding
    # table is synthesized deterministically with the same (vocab, dim) shape.
    ks = jax.random.split(key, 7)
    bound = 1.0 / jnp.sqrt(HIDDEN_DIM)
    u = lambda k, shape, b: jax.random.uniform(k, shape, jnp.float32, -b, b)
    params = {
        "embedding": jax.random.normal(ks[0], (VOCAB_SIZE, EMBED_DIM), jnp.float32),
        # PyTorch stores weight_ih_l0 as (4H, E); we keep the transposed (E, 4H).
        "w_ih": u(ks[1], (EMBED_DIM, 4 * HIDDEN_DIM), bound),
        "w_hh": u(ks[2], (HIDDEN_DIM, 4 * HIDDEN_DIM), bound),
        # b = b_ih + b_hh combined, kept 2D for clean broadcasting in-kernel.
        "b": (u(ks[3], (1, 4 * HIDDEN_DIM), bound)
              + u(ks[4], (1, 4 * HIDDEN_DIM), bound)),
        "w_fc": u(ks[5], (HIDDEN_DIM, OUTPUT_DIM), bound),
        "b_fc": u(ks[6], (1, OUTPUT_DIM), bound),
    }
    return params


# ---------------------------------- main ---------------------------------------
if __name__ == "__main__":
    key = jax.random.PRNGKey(0)
    k_x, k_p = jax.random.split(key)

    x = jax.random.randint(k_x, (BATCH, SEQ_LEN), 0, VOCAB_SIZE, dtype=jnp.int32)
    params = init_params(k_p)

    out = lstm_model_forward(x, params)
    out = jax.block_until_ready(out)

    ref = lstm_model_reference(x, params)
    assert out.shape == (BATCH, OUTPUT_DIM), out.shape
    assert jnp.allclose(out, ref, atol=1e-5, rtol=1e-5), (out, ref)

    print("KERNEL_OK")
</pallas_src>

<mosaic_0001>
module attributes {stable_mosaic.version = 11 : i64} {
  func.func @lstm_fused_kernel(%arg0: memref<64x1xi32, #tpu.memory_space<vmem>>, %arg1: memref<50x100xf32, #tpu.memory_space<vmem>>, %arg2: memref<100x128xf32, #tpu.memory_space<vmem>>, %arg3: memref<32x128xf32, #tpu.memory_space<vmem>>, %arg4: memref<1x128xf32, #tpu.memory_space<vmem>>, %arg5: memref<1x32xf32, #tpu.memory_space<vmem>>, %arg6: memref<1x1xf32, #tpu.memory_space<vmem>>, %arg7: memref<8x1xf32, #tpu.memory_space<vmem>>) attributes {dimension_semantics = [], scalar_prefetch = 0 : i64, scratch_operands = 0 : i64, tpu.core_type = #tpu.core_type<tc>} {
    %c0 = arith.constant 0 : index
    %c0_0 = arith.constant 0 : index
    %0 = vector.load %arg0[%c0, %c0_0] : memref<64x1xi32, #tpu.memory_space<vmem>>, vector<64x1xi32>
    %1 = tpu.iota {dimensions = array<i32: 1>} : vector<64x50xi32>
    %2 = vector.broadcast %0 : vector<64x1xi32> to vector<64x50xi32>
    %3 = arith.cmpi eq, %2, %1 : vector<64x50xi32>
    %4 = arith.extui %3 : vector<64x50xi1> to vector<64x50xi32>
    %5 = arith.sitofp %4 : vector<64x50xi32> to vector<64x50xf32>
    %c0_1 = arith.constant 0 : index
    %c0_2 = arith.constant 0 : index
    %6 = vector.load %arg1[%c0_1, %c0_2] : memref<50x100xf32, #tpu.memory_space<vmem>>, vector<50x100xf32>
    %cst = arith.constant dense<0.000000e+00> : vector<64x100xf32>
    %7 = tpu.matmul %5, %6, %cst {dimension_numbers = #tpu.dot_dimension_numbers<[1], [0], [0], [1], [0, 0, 1, 1], [], []>} : vector<64x50xf32>, vector<50x100xf32>, vector<64x100xf32> -> vector<64x100xf32>
    %c0_3 = arith.constant 0 : index
    %c0_4 = arith.constant 0 : index
    %8 = vector.load %arg2[%c0_3, %c0_4] : memref<100x128xf32, #tpu.memory_space<vmem>>, vector<100x128xf32>
    %cst_5 = arith.constant dense<0.000000e+00> : vector<64x128xf32>
    %9 = tpu.matmul %7, %8, %cst_5 {dimension_numbers = #tpu.dot_dimension_numbers<[1], [0], [0], [1], [0, 0, 1, 1], [], []>} : vector<64x100xf32>, vector<100x128xf32>, vector<64x128xf32> -> vector<64x128xf32>
    %c0_6 = arith.constant 0 : index
    %c0_7 = arith.constant 0 : index
    %10 = vector.load %arg4[%c0_6, %c0_7] : memref<1x128xf32, #tpu.memory_space<vmem>>, vector<1x128xf32>
    %11 = vector.broadcast %10 : vector<1x128xf32> to vector<64x128xf32>
    %12 = arith.addf %9, %11 : vector<64x128xf32>
    %c0_8 = arith.constant 0 : index
    %c0_9 = arith.constant 0 : index
    %13 = vector.load %arg3[%c0_8, %c0_9] : memref<32x128xf32, #tpu.memory_space<vmem>>, vector<32x128xf32>
    %cst_10 = arith.constant 0.000000e+00 : f32
    %14 = vector.broadcast %cst_10 : f32 to vector<8x32xf32>
    %cst_11 = arith.constant 0.000000e+00 : f32
    %15 = vector.broadcast %cst_11 : f32 to vector<8x32xf32>
    %16 = vector.extract_strided_slice %12 {offsets = [0, 0], sizes = [8, 128], strides = [1, 1]} : vector<64x128xf32> to vector<8x128xf32>
    %cst_12 = arith.constant dense<0.000000e+00> : vector<8x128xf32>
    %17 = tpu.matmul %14, %13, %cst_12 {dimension_numbers = #tpu.dot_dimension_numbers<[1], [0], [0], [1], [0, 0, 1, 1], [], []>} : vector<8x32xf32>, vector<32x128xf32>, vector<8x128xf32> -> vector<8x128xf32>
    %18 = arith.addf %16, %17 : vector<8x128xf32>
    %19 = arith.negf %18 : vector<8x128xf32>
    %20 = math.exp %19 : vector<8x128xf32>
    %cst_13 = arith.constant 1.000000e+00 : f32
    %21 = vector.broadcast %cst_13 : f32 to vector<8x128xf32>
    %22 = arith.addf %21, %20 : vector<8x128xf32>
    %23 = arith.divf %21, %22 : vector<8x128xf32>
    %24 = math.tanh %18 : vector<8x128xf32>
    %25 = vector.extract_strided_slice %23 {offsets = [0, 0], sizes = [8, 32], strides = [1, 1]} : vector<8x128xf32> to vector<8x32xf32>
    %26 = vector.extract_strided_slice %23 {offsets = [0, 32], sizes = [8, 32], strides = [1, 1]} : vector<8x128xf32> to vector<8x32xf32>
    %27 = vector.extract_strided_slice %24 {offsets = [0, 64], sizes = [8, 32], strides = [1, 1]} : vector<8x128xf32> to vector<8x32xf32>
    %28 = vector.extract_strided_slice %23 {offsets = [0, 96], sizes = [8, 32], strides = [1, 1]} : vector<8x128xf32> to vector<8x32xf32>
    %29 = arith.mulf %26, %15 : vector<8x32xf32>
    %30 = arith.mulf %25, %27 : vector<8x32xf32>
    %31 = arith.addf %29, %30 : vector<8x32xf32>
    %32 = math.tanh %31 : vector<8x32xf32>
    %33 = arith.mulf %28, %32 : vector<8x32xf32>
    %34 = vector.extract_strided_slice %12 {offsets = [8, 0], sizes = [8, 128], strides = [1, 1]} : vector<64x128xf32> to vector<8x128xf32>
    %cst_14 = arith.constant dense<0.000000e+00> : vector<8x128xf32>
    %35 = tpu.matmul %33, %13, %cst_14 {dimension_numbers = #tpu.dot_dimension_numbers<[1], [0], [0], [1], [0, 0, 1, 1], [], []>} : vector<8x32xf32>, vector<32x128xf32>, vector<8x128xf32> -> vector<8x128xf32>
    %36 = arith.addf %34, %35 : vector<8x128xf32>
    %37 = arith.negf %36 : vector<8x128xf32>
    %38 = math.exp %37 : vector<8x128xf32>
    %cst_15 = arith.constant 1.000000e+00 : f32
    %39 = vector.broadcast %cst_15 : f32 to vector<8x128xf32>
    %40 = arith.addf %39, %38 : vector<8x128xf32>
    %41 = arith.divf %39, %40 : vector<8x128xf32>
    %42 = math.tanh %36 : vector<8x128xf32>
    %43 = vector.extract_strided_slice %41 {offsets = [0, 0], sizes = [8, 32], strides = [1, 1]} : vector<8x128xf32> to vector<8x32xf32>
    %44 = vector.extract_strided_slice %41 {offsets = [0, 32], sizes = [8, 32], strides = [1, 1]} : vector<8x128xf32> to vector<8x32xf32>
    %45 = vector.extract_strided_slice %42 {offsets = [0, 64], sizes = [8, 32], strides = [1, 1]} : vector<8x128xf32> to vector<8x32xf32>
    %46 = vector.extract_strided_slice %41 {offsets = [0, 96], sizes = [8, 32], strides = [1, 1]} : vector<8x128xf32> to vector<8x32xf32>
    %47 = arith.mulf %44, %31 : vector<8x32xf32>
    %48 = arith.mulf %43, %45 : vector<8x32xf32>
    %49 = arith.addf %47, %48 : vector<8x32xf32>
    %50 = math.tanh %49 : vector<8x32xf32>
    %51 = arith.mulf %46, %50 : vector<8x32xf32>
    %52 = vector.extract_strided_slice %12 {offsets = [16, 0], sizes = [8, 128], strides = [1, 1]} : vector<64x128xf32> to vector<8x128xf32>
    %cst_16 = arith.constant dense<0.000000e+00> : vector<8x128xf32>
    %53 = tpu.matmul %51, %13, %cst_16 {dimension_numbers = #tpu.dot_dimension_numbers<[1], [0], [0], [1], [0, 0, 1, 1], [], []>} : vector<8x32xf32>, vector<32x128xf32>, vector<8x128xf32> -> vector<8x128xf32>
    %54 = arith.addf %52, %53 : vector<8x128xf32>
    %55 = arith.negf %54 : vector<8x128xf32>
    %56 = math.exp %55 : vector<8x128xf32>
    %cst_17 = arith.constant 1.000000e+00 : f32
    %57 = vector.broadcast %cst_17 : f32 to vector<8x128xf32>
    %58 = arith.addf %57, %56 : vector<8x128xf32>
    %59 = arith.divf %57, %58 : vector<8x128xf32>
    %60 = math.tanh %54 : vector<8x128xf32>
    %61 = vector.extract_strided_slice %59 {offsets = [0, 0], sizes = [8, 32], strides = [1, 1]} : vector<8x128xf32> to vector<8x32xf32>
    %62 = vector.extract_strided_slice %59 {offsets = [0, 32], sizes = [8, 32], strides = [1, 1]} : vector<8x128xf32> to vector<8x32xf32>
    %63 = vector.extract_strided_slice %60 {offsets = [0, 64], sizes = [8, 32], strides = [1, 1]} : vector<8x128xf32> to vector<8x32xf32>
    %64 = vector.extract_strided_slice %59 {offsets = [0, 96], sizes = [8, 32], strides = [1, 1]} : vector<8x128xf32> to vector<8x32xf32>
    %65 = arith.mulf %62, %49 : vector<8x32xf32>
    %66 = arith.mulf %61, %63 : vector<8x32xf32>
    %67 = arith.addf %65, %66 : vector<8x32xf32>
    %68 = math.tanh %67 : vector<8x32xf32>
    %69 = arith.mulf %64, %68 : vector<8x32xf32>
    %70 = vector.extract_strided_slice %12 {offsets = [24, 0], sizes = [8, 128], strides = [1, 1]} : vector<64x128xf32> to vector<8x128xf32>
    %cst_18 = arith.constant dense<0.000000e+00> : vector<8x128xf32>
    %71 = tpu.matmul %69, %13, %cst_18 {dimension_numbers = #tpu.dot_dimension_numbers<[1], [0], [0], [1], [0, 0, 1, 1], [], []>} : vector<8x32xf32>, vector<32x128xf32>, vector<8x128xf32> -> vector<8x128xf32>
    %72 = arith.addf %70, %71 : vector<8x128xf32>
    %73 = arith.negf %72 : vector<8x128xf32>
    %74 = math.exp %73 : vector<8x128xf32>
    %cst_19 = arith.constant 1.000000e+00 : f32
    %75 = vector.broadcast %cst_19 : f32 to vector<8x128xf32>
    %76 = arith.addf %75, %74 : vector<8x128xf32>
    %77 = arith.divf %75, %76 : vector<8x128xf32>
    %78 = math.tanh %72 : vector<8x128xf32>
    %79 = vector.extract_strided_slice %77 {offsets = [0, 0], sizes = [8, 32], strides = [1, 1]} : vector<8x128xf32> to vector<8x32xf32>
    %80 = vector.extract_strided_slice %77 {offsets = [0, 32], sizes = [8, 32], strides = [1, 1]} : vector<8x128xf32> to vector<8x32xf32>
    %81 = vector.extract_strided_slice %78 {offsets = [0, 64], sizes = [8, 32], strides = [1, 1]} : vector<8x128xf32> to vector<8x32xf32>
    %82 = vector.extract_strided_slice %77 {offsets = [0, 96], sizes = [8, 32], strides = [1, 1]} : vector<8x128xf32> to vector<8x32xf32>
    %83 = arith.mulf %80, %67 : vector<8x32xf32>
    %84 = arith.mulf %79, %81 : vector<8x32xf32>
    %85 = arith.addf %83, %84 : vector<8x32xf32>
    %86 = math.tanh %85 : vector<8x32xf32>
    %87 = arith.mulf %82, %86 : vector<8x32xf32>
    %88 = vector.extract_strided_slice %12 {offsets = [32, 0], sizes = [8, 128], strides = [1, 1]} : vector<64x128xf32> to vector<8x128xf32>
    %cst_20 = arith.constant dense<0.000000e+00> : vector<8x128xf32>
    %89 = tpu.matmul %87, %13, %cst_20 {dimension_numbers = #tpu.dot_dimension_numbers<[1], [0], [0], [1], [0, 0, 1, 1], [], []>} : vector<8x32xf32>, vector<32x128xf32>, vector<8x128xf32> -> vector<8x128xf32>
    %90 = arith.addf %88, %89 : vector<8x128xf32>
    %91 = arith.negf %90 : vector<8x128xf32>
    %92 = math.exp %91 : vector<8x128xf32>
    %cst_21 = arith.constant 1.000000e+00 : f32
    %93 = vector.broadcast %cst_21 : f32 to vector<8x128xf32>
    %94 = arith.addf %93, %92 : vector<8x128xf32>
    %95 = arith.divf %93, %94 : vector<8x128xf32>
    %96 = math.tanh %90 : vector<8x128xf32>
    %97 = vector.extract_strided_slice %95 {offsets = [0, 0], sizes = [8, 32], strides = [1, 1]} : vector<8x128xf32> to vector<8x32xf32>
    %98 = vector.extract_strided_slice %95 {offsets = [0, 32], sizes = [8, 32], strides = [1, 1]} : vector<8x128xf32> to vector<8x32xf32>
    %99 = vector.extract_strided_slice %96 {offsets = [0, 64], sizes = [8, 32], strides = [1, 1]} : vector<8x128xf32> to vector<8x32xf32>
    %100 = vector.extract_strided_slice %95 {offsets = [0, 96], sizes = [8, 32], strides = [1, 1]} : vector<8x128xf32> to vector<8x32xf32>
    %101 = arith.mulf %98, %85 : vector<8x32xf32>
    %102 = arith.mulf %97, %99 : vector<8x32xf32>
    %103 = arith.addf %101, %102 : vector<8x32xf32>
    %104 = math.tanh %103 : vector<8x32xf32>
    %105 = arith.mulf %100, %104 : vector<8x32xf32>
    %106 = vector.extract_strided_slice %12 {offsets = [40, 0], sizes = [8, 128], strides = [1, 1]} : vector<64x128xf32> to vector<8x128xf32>
    %cst_22 = arith.constant dense<0.000000e+00> : vector<8x128xf32>
    %107 = tpu.matmul %105, %13, %cst_22 {dimension_numbers = #tpu.dot_dimension_numbers<[1], [0], [0], [1], [0, 0, 1, 1], [], []>} : vector<8x32xf32>, vector<32x128xf32>, vector<8x128xf32> -> vector<8x128xf32>
    %108 = arith.addf %106, %107 : vector<8x128xf32>
    %109 = arith.negf %108 : vector<8x128xf32>
    %110 = math.exp %109 : vector<8x128xf32>
    %cst_23 = arith.constant 1.000000e+00 : f32
    %111 = vector.broadcast %cst_23 : f32 to vector<8x128xf32>
    %112 = arith.addf %111, %110 : vector<8x128xf32>
    %113 = arith.divf %111, %112 : vector<8x128xf32>
    %114 = math.tanh %108 : vector<8x128xf32>
    %115 = vector.extract_strided_slice %113 {offsets = [0, 0], sizes = [8, 32], strides = [1, 1]} : vector<8x128xf32> to vector<8x32xf32>
    %116 = vector.extract_strided_slice %113 {offsets = [0, 32], sizes = [8, 32], strides = [1, 1]} : vector<8x128xf32> to vector<8x32xf32>
    %117 = vector.extract_strided_slice %114 {offsets = [0, 64], sizes = [8, 32], strides = [1, 1]} : vector<8x128xf32> to vector<8x32xf32>
    %118 = vector.extract_strided_slice %113 {offsets = [0, 96], sizes = [8, 32], strides = [1, 1]} : vector<8x128xf32> to vector<8x32xf32>
    %119 = arith.mulf %116, %103 : vector<8x32xf32>
    %120 = arith.mulf %115, %117 : vector<8x32xf32>
    %121 = arith.addf %119, %120 : vector<8x32xf32>
    %122 = math.tanh %121 : vector<8x32xf32>
    %123 = arith.mulf %118, %122 : vector<8x32xf32>
    %124 = vector.extract_strided_slice %12 {offsets = [48, 0], sizes = [8, 128], strides = [1, 1]} : vector<64x128xf32> to vector<8x128xf32>
    %cst_24 = arith.constant dense<0.000000e+00> : vector<8x128xf32>
    %125 = tpu.matmul %123, %13, %cst_24 {dimension_numbers = #tpu.dot_dimension_numbers<[1], [0], [0], [1], [0, 0, 1, 1], [], []>} : vector<8x32xf32>, vector<32x128xf32>, vector<8x128xf32> -> vector<8x128xf32>
    %126 = arith.addf %124, %125 : vector<8x128xf32>
    %127 = arith.negf %126 : vector<8x128xf32>
    %128 = math.exp %127 : vector<8x128xf32>
    %cst_25 = arith.constant 1.000000e+00 : f32
    %129 = vector.broadcast %cst_25 : f32 to vector<8x128xf32>
    %130 = arith.addf %129, %128 : vector<8x128xf32>
    %131 = arith.divf %129, %130 : vector<8x128xf32>
    %132 = math.tanh %126 : vector<8x128xf32>
    %133 = vector.extract_strided_slice %131 {offsets = [0, 0], sizes = [8, 32], strides = [1, 1]} : vector<8x128xf32> to vector<8x32xf32>
    %134 = vector.extract_strided_slice %131 {offsets = [0, 32], sizes = [8, 32], strides = [1, 1]} : vector<8x128xf32> to vector<8x32xf32>
    %135 = vector.extract_strided_slice %132 {offsets = [0, 64], sizes = [8, 32], strides = [1, 1]} : vector<8x128xf32> to vector<8x32xf32>
    %136 = vector.extract_strided_slice %131 {offsets = [0, 96], sizes = [8, 32], strides = [1, 1]} : vector<8x128xf32> to vector<8x32xf32>
    %137 = arith.mulf %134, %121 : vector<8x32xf32>
    %138 = arith.mulf %133, %135 : vector<8x32xf32>
    %139 = arith.addf %137, %138 : vector<8x32xf32>
    %140 = math.tanh %139 : vector<8x32xf32>
    %141 = arith.mulf %136, %140 : vector<8x32xf32>
    %142 = vector.extract_strided_slice %12 {offsets = [56, 0], sizes = [8, 128], strides = [1, 1]} : vector<64x128xf32> to vector<8x128xf32>
    %cst_26 = arith.constant dense<0.000000e+00> : vector<8x128xf32>
    %143 = tpu.matmul %141, %13, %cst_26 {dimension_numbers = #tpu.dot_dimension_numbers<[1], [0], [0], [1], [0, 0, 1, 1], [], []>} : vector<8x32xf32>, vector<32x128xf32>, vector<8x128xf32> -> vector<8x128xf32>
    %144 = arith.addf %142, %143 : vector<8x128xf32>
    %145 = arith.negf %144 : vector<8x128xf32>
    %146 = math.exp %145 : vector<8x128xf32>
    %cst_27 = arith.constant 1.000000e+00 : f32
    %147 = vector.broadcast %cst_27 : f32 to vector<8x128xf32>
    %148 = arith.addf %147, %146 : vector<8x128xf32>
    %149 = arith.divf %147, %148 : vector<8x128xf32>
    %150 = math.tanh %144 : vector<8x128xf32>
    %151 = vector.extract_strided_slice %149 {offsets = [0, 0], sizes = [8, 32], strides = [1, 1]} : vector<8x128xf32> to vector<8x32xf32>
    %152 = vector.extract_strided_slice %149 {offsets = [0, 32], sizes = [8, 32], strides = [1, 1]} : vector<8x128xf32> to vector<8x32xf32>
    %153 = vector.extract_strided_slice %150 {offsets = [0, 64], sizes = [8, 32], strides = [1, 1]} : vector<8x128xf32> to vector<8x32xf32>
    %154 = vector.extract_strided_slice %149 {offsets = [0, 96], sizes = [8, 32], strides = [1, 1]} : vector<8x128xf32> to vector<8x32xf32>
    %155 = arith.mulf %152, %139 : vector<8x32xf32>
    %156 = arith.mulf %151, %153 : vector<8x32xf32>
    %157 = arith.addf %155, %156 : vector<8x32xf32>
    %158 = math.tanh %157 : vector<8x32xf32>
    %159 = arith.mulf %154, %158 : vector<8x32xf32>
    %c0_28 = arith.constant 0 : index
    %c0_29 = arith.constant 0 : index
    %160 = vector.load %arg5[%c0_28, %c0_29] : memref<1x32xf32, #tpu.memory_space<vmem>>, vector<1x32xf32>
    %161 = vector.broadcast %160 : vector<1x32xf32> to vector<8x32xf32>
    %162 = arith.mulf %159, %161 : vector<8x32xf32>
    %cst_30 = arith.constant dense<0.000000e+00> : vector<8xf32>
    %163 = vector.multi_reduction <add>, %162, %cst_30 [1] : vector<8x32xf32> to vector<8xf32>
    %164 = vector.shape_cast %163 : vector<8xf32> to vector<8x1xf32>
    %c0_31 = arith.constant 0 : index
    %c0_32 = arith.constant 0 : index
    %165 = vector.load %arg6[%c0_31, %c0_32] : memref<1x1xf32, #tpu.memory_space<vmem>>, vector<1x1xf32>
    %166 = vector.broadcast %165 : vector<1x1xf32> to vector<8x1xf32>
    %167 = arith.addf %164, %166 : vector<8x1xf32>
    %168 = arith.negf %167 : vector<8x1xf32>
    %169 = math.exp %168 : vector<8x1xf32>
    %cst_33 = arith.constant 1.000000e+00 : f32
    %170 = vector.broadcast %cst_33 : f32 to vector<8x1xf32>
    %171 = arith.addf %170, %169 : vector<8x1xf32>
    %172 = arith.divf %170, %171 : vector<8x1xf32>
    %c0_34 = arith.constant 0 : index
    %c0_35 = arith.constant 0 : index
    %173 = vector.load %arg7[%c0_34, %c0_35] : memref<8x1xf32, #tpu.memory_space<vmem>>, vector<8x1xf32>
    tpu.vector_store %arg7[%c0_34, %c0_35], %172 {strides = array<i32>} : memref<8x1xf32, #tpu.memory_space<vmem>>, vector<8x1xf32>,
    return
  }
}

</mosaic_0001>

<bundles_post_ra>
// kernel: lstm_model_forward.1
= control target key start
LH: loop header
LB: loop body
LE: loop exit
PB: predicated region body
PF: predicated region fallthrough
CT: control target
= control target key end

     0   :  { %s2022_s0 = inlined_call_operand.vmem [shape: s32[64,1], index: 0, kind: input, shape index: {}]   ;;  %s2023_s1 = inlined_call_operand.hbm [shape: f32[50,100], index: 1, kind: input, shape index: {}]   ;;  %s2024_s2 = inlined_call_operand.vmem [shape: f32[100,128], index: 2, kind: input, shape index: {}]   ;;  %s2025_s3 = inlined_call_operand.hbm [shape: f32[32,128], index: 3, kind: input, shape index: {}]   ;;  %s2026_s4 = inlined_call_operand.vmem [shape: f32[1,128], index: 4, kind: input, shape index: {}]   ;;  %s2027_s5 = inlined_call_operand.vmem [shape: f32[1,32], index: 5, kind: input, shape index: {}]   ;;  %s2028_s6 = inlined_call_operand.<no memory space> [shape: f32[1,1], index: 6, kind: input, shape index: {}]   ;;  %s2029_s7 = inlined_call_operand.vmem [shape: f32[8,1], index: 7, kind: output, shape index: {}]  }
   0x1   :  { %v12_v0 = vstv %s2028_s6 }
   0x2   :  { %13 = vst [vmem:[#allocation2] sm:$0x1] %v12_v0 }
   0x3   :  { %14 = vsyncpa [#allocation4], 0 }
   0x4   :  { %15 = vsyncpa [#allocation6], 0  ;;  %s1737_s26 = smov [#allocation3]   ;;  %s1689_s30 = scalar_lea.hbm %s2023_s1, 896 }
   0x5   :  { %s23_s27 = sshll.u32 %s1737_s26, 4  ;;  %p1690_p0 = scmp.ne.s32.totalorder %s2023_s1, %s1689_s30  ;;  %s24_s27 = int_to_ptr.vmem [resolvable:$true] %s23_s27 }
   0x6   :  { %p1693_p1 = scmp.lt.u32.totalorder %s1689_s30, %s2023_s1 }
   0x8   :  { %p1695_p2 = pnand %p1693_p1, %p1690_p0 }
   0xa   :  { %1698 = shalt.err (!%p1695_p2)
}
   0xb   :  { %s1699_s6 = scalar_lea.vmem %s24_s27, 896  ;;  %p1704_p4 = scmp.lt.s32.totalorder %s24_s27, %s24_s27 }
   0xc   :  { %p1700_p3 = scmp.ne.s32.totalorder %s24_s27, %s1699_s6  ;;  %p1705_p5 = scmp.lt.s32.totalorder %s1699_s6, %s1699_s6 }
   0xe   :  { %p1706_p6 = por %p1705_p5, %p1704_p4 }
  0x10   :  { %p1707_p7 = pnand %p1706_p6, %p1700_p3 }
  0x12   :  { %1710 = shalt.err (!%p1707_p7)
}
  0x13   :  { %s1738_s12 = smov 128   ;;  %s1739_s13 = smov 8  }
  0x14   :  { %29 = dma.hbm_to_vmem [thread:$0]  %s2023_s1, 896, %s24_s27, [#allocation4], %s1738_s12, %s1738_s12, %s1739_s13  }
  0x15   :  { %s1740_s16 = smov [#allocation5]   ;;  %s1711_s20 = scalar_lea.hbm %s2025_s3, 512 }
  0x16   :  { %s37_s17 = sshll.u32 %s1740_s16, 4  ;;  %p1712_p8 = scmp.ne.s32.totalorder %s2025_s3, %s1711_s20  ;;  %s38_s17 = int_to_ptr.vmem [resolvable:$true] %s37_s17 }
  0x17   :  { %p1715_p9 = scmp.lt.u32.totalorder %s1711_s20, %s2025_s3 }
  0x19   :  { %p1717_p10 = pnand %p1715_p9, %p1712_p8 }
  0x1b   :  { %1720 = shalt.err (!%p1717_p10)
}
  0x1c   :  { %s1721_s25 = scalar_lea.vmem %s38_s17, 512  ;;  %p1726_p12 = scmp.lt.s32.totalorder %s38_s17, %s38_s17 }
  0x1d   :  { %p1722_p11 = scmp.ne.s32.totalorder %s38_s17, %s1721_s25  ;;  %p1727_p13 = scmp.lt.s32.totalorder %s1721_s25, %s1721_s25 }
  0x1f   :  { %p1728_p0 = por %p1727_p13, %p1726_p12 }
  0x21   :  { %p1729_p1 = pnand %p1728_p0, %p1722_p11 }
  0x23   :  { %1732 = shalt.err (!%p1729_p1)
}
  0x24   :  { %43 = dma.hbm_to_vmem [thread:$0]  %s2025_s3, 512, %s38_s17, [#allocation6], %s1738_s12, %s1738_s12, %s1739_s13  }
  0x25   :  { %1733 = dma.done.wait [#allocation4], 896  }
  0x26   :  { %1734 = vsyncadd [#allocation4], 4294966400 }
  0x27   :  { %1735 = dma.done.wait [#allocation6], 512  }
  0x28   :  { %1736 = vsyncadd [#allocation6], 4294966784  ;;  %v1741_v1 = vmov 0   ;;  %v56_v2 = vld [vmem:[%s2022_s0] sm:$0xff]  ;;  %v58_v3 = vld [vmem:[%s2022_s0 + $0x10] sm:$0xff]  ;;  %vm146_vm0 = vcmask 1041408   ;;  %v64_v39 = vlaneseq }
  0x29   :  { %1619 = vset.pattern.permute.xlu0 %v1741_v1  ;;  %1620 = vset.pattern.permute.xlu1 %v1741_v1  ;;  %v57_v4 = vld [vmem:[%s2022_s0 + $0x8] sm:$0xff]  ;;  %v59_v5 = vld [vmem:[%s2022_s0 + $0x18] sm:$0xff]  ;;  %v60_v14 = vld [vmem:[%s2022_s0 + $0x20] sm:$0xff]  ;;  %v1742_v28 = vmov 0.0|0.0   ;;  %vm121_vm1 = vcmask 408576   ;;  %v1743_v45 = vmov 0.0  }
  0x2a   :  { %67 = vperm.xlu0 %1619, %v56_v2   ;;  %73 = vperm.xlu1 %1620, %v58_v3   ;;  %v114_v6 = vld [vmem:[#allocation3] sm:$0xff]  ;;  %v115_v7 = vld [vmem:[#allocation3 + $0x8] sm:$0xff]  ;;  %v116_v9 = vld [vmem:[#allocation3 + $0x10] sm:$0xff]  ;;  %v65_v40 = vand.u32 127, %v64_v39  ;;  %vm300_vm10 = vcmask 1043456   ;;  %vm1744_vm11 = vmmov 0  }
  0x2b   :  { %v1524_v8 = vpack.c.bf16 %v115_v7, %v114_v6  ;;  %v117_v10 = vld [vmem:[#allocation3 + $0x18] sm:$0xff]  ;;  %v118_v12 = vld [vmem:[#allocation3 + $0x20] sm:$0xff]  ;;  %v119_v13 = vld [vmem:[#allocation3 + $0x28] sm:$0xff]  ;;  %vm275_vm12 = vcmask 818176   ;;  %s1746_s18 = smov 32   ;;  %vm413_vm13 = vcmask 261120  }
  0x2c   :  { %v1528_v11 = vpack.c.bf16 %v117_v10, %v116_v9  ;;  %v61_v15 = vld [vmem:[%s2022_s0 + $0x28] sm:$0xff]  ;;  %v1532_v16 = vpack.c.bf16 %v119_v13, %v118_v12  ;;  %v62_v17 = vld [vmem:[%s2022_s0 + $0x30] sm:$0xff]  ;;  %v63_v19 = vld [vmem:[%s2022_s0 + $0x38] sm:$0xff]  ;;  %s1747_s21 = smov 96   ;;  %vm1243_vm14 = vcmask 7168  }
  0x2d   :  { %1525 = vmatprep.subr.bf16.mxu0 %v1524_v8  ;;  %v120_v18 = vld [vmem:[#allocation3 + $0x30] sm:$0x3]  ;;  %v255_v20 = vld [vmem:[%s2024_s2] sm:$0xff]  ;;  %v256_v21 = vld [vmem:[%s2024_s2 + $0x8] sm:$0xff] }
  0x2e   :  { %70 = vperm.xlu0 %1619, %v57_v4   ;;  %76 = vperm.xlu1 %1620, %v59_v5   ;;  %v1536_v22 = vpack.c.bf16 %v256_v21, %v255_v20  ;;  %v257_v23 = vld [vmem:[%s2024_s2 + $0x10] sm:$0xff]  ;;  %v258_v24 = vld [vmem:[%s2024_s2 + $0x18] sm:$0xff]  ;;  %v259_v26 = vld [vmem:[%s2024_s2 + $0x20] sm:$0xff] }
  0x2f   :  { %1527 = vmatpush3.bf16.msra.mxu0 %v1524_v8  ;;  %v1540_v25 = vpack.c.bf16 %v258_v24, %v257_v23  ;;  %v260_v27 = vld [vmem:[%s2024_s2 + $0x28] sm:$0xff]  ;;  %v261_v30 = vld [vmem:[%s2024_s2 + $0x30] sm:$0xff]  ;;  %v262_v31 = vld [vmem:[%s2024_s2 + $0x38] sm:$0xff] }
  0x30   :  { %1529 = vmatprep.subr.bf16.mxu0 %v1528_v11  ;;  %1537 = vmatprep.subr.bf16.mxu1 %v1536_v22  ;;  %v1544_v29 = vpack.c.bf16 %v260_v27, %v259_v26  ;;  %v1548_v32 = vpack.c.bf16 %v262_v31, %v261_v30  ;;  %v263_v33 = vld [vmem:[%s2024_s2 + $0x40] sm:$0xff]  ;;  %v264_v34 = vld [vmem:[%s2024_s2 + $0x48] sm:$0xff]  ;;  %v265_v36 = vld [vmem:[%s2024_s2 + $0x50] sm:$0xff] }
  0x31   :  { %1539 = vmatpush3.bf16.msra.mxu1 %v1536_v22  ;;  %v1552_v35 = vpack.c.bf16 %v264_v34, %v263_v33  ;;  %v266_v37 = vld [vmem:[%s2024_s2 + $0x58] sm:$0xff]  ;;  %v410_v44 = vld [vmem:[#allocation5 + $0x8] sm:$0xff]  ;;  %v411_v51 = vld [vmem:[#allocation5 + $0x10] sm:$0xff] }
  0x32   :  { %79 = vperm.xlu0 %1619, %v60_v14   ;;  %82 = vperm.xlu1 %1620, %v61_v15   ;;  %v1556_v38 = vpack.c.bf16 %v266_v37, %v265_v36  ;;  %v409_v43 = vld [vmem:[#allocation5] sm:$0xff]  ;;  %v412_v52 = vld [vmem:[#allocation5 + $0x18] sm:$0xff] }
  0x33   :  { %1531 = vmatpush3.bf16.msra.mxu0 %v1528_v11  ;;  %1541 = vmatprep.subr.bf16.mxu1 %v1540_v25  ;;  %v1878_v49 = vpack.c.bf16 %v410_v44, %v409_v43  ;;  %v1886_v57 = vpack.c.bf16 %v412_v52, %v411_v51  ;;  %v267_v0 = vld [vmem:[%s2024_s2 + $0x60] sm:$0xf] }
  0x34   :  { %1533 = vmatprep.subr.bf16.mxu0 %v1532_v16  ;;  %v1268_v11 = vld [vmem:[%s2026_s4] ss:$0 sm:$0xff]  ;;  %s1745_s4 = smov 64  }
  0x35   :  { %1543 = vmatpush3.bf16.msra.mxu1 %v1540_v25 }
  0x36   :  { %85 = vperm.xlu0 %1619, %v62_v17   ;;  %88 = vperm.xlu1 %1620, %v63_v19  }
  0x37   :  { %1535 = vmatpush3.bf16.msra.mxu0 %v1532_v16  ;;  %1545 = vmatprep.subr.bf16.mxu1 %v1544_v29 }
  0x38   :  { %1384 = vmatprep.subr.msk.mxu0 %vm146_vm0, %v120_v18 }
  0x39   :  { %1547 = vmatpush3.bf16.msra.mxu1 %v1544_v29 }
  0x3a   :  { %1549 = vmatprep.subr.bf16.mxu1 %v1548_v32 }
  0x3b   :  { %1385 = vmatpush3.msk.msra.mxu0 %vm146_vm0, %v120_v18 }
  0x3c   :  { %1560 = vmatprep.subr.bf16.mxu0 %v1742_v28 }
  0x3d   :  { %1551 = vmatpush3.bf16.msra.mxu1 %v1548_v32 }
  0x3e   :  { %1553 = vmatprep.subr.bf16.mxu1 %v1552_v35 }
  0x41   :  { %1555 = vmatpush3.bf16.msra.mxu1 %v1552_v35 }
  0x42   :  { %1557 = vmatprep.subr.bf16.mxu1 %v1556_v38 }
  0x45   :  { %1559 = vmatpush3.bf16.msra.mxu1 %v1556_v38 }
  0x46   :  { %1422 = vmatprep.subr.msk.mxu1 %vm300_vm10, %v267_v0 }
  0x49   :  { %1423 = vmatpush3.msk.msra.mxu1 %vm300_vm10, %v267_v0 }
  0x4a   :  { %1572 = vmatprep.subr.bf16.mxu1 %v1742_v28 }
  0xa9   :  { %v68_v41 = vpop.permute.xlu0 %67  ;;  %v74_v42 = vpop.permute.xlu1 %73 }
  0xaa   :  { %vm90_vm2 = vcmp.eq.s32.totalorder %v68_v41, %v65_v40  ;;  %vm92_vm3 = vcmp.eq.s32.totalorder %v74_v42, %v65_v40 }
  0xab   :  { %v1251_v46 = vsel %vm90_vm2, 1.0, %v1743_v45  ;;  %v1253_v50 = vsel %vm92_vm3, 1.0, %v1743_v45 }
  0xac   :  { %1386 = vmatprep.mubr.msk.f32.mxu0 %vm121_vm1, %v1251_v46 }
  0xad   :  { %v71_v47 = vpop.permute.xlu0 %70  ;;  %v77_v48 = vpop.permute.xlu1 %76 }
  0xae   :  { %vm91_vm4 = vcmp.eq.s32.totalorder %v71_v47, %v65_v40  ;;  %vm93_vm5 = vcmp.eq.s32.totalorder %v77_v48, %v65_v40 }
  0xaf   :  { %v1252_v53 = vsel %vm91_vm4, 1.0, %v1743_v45  ;;  %v1254_v54 = vsel %vm93_vm5, 1.0, %v1743_v45 }
  0xb0   :  { %1387 = vmatmul.mubr.msk.f32.vlgmr.msra.gmra.mrb[0].mxu0 %vm121_vm1, %v1252_v53 }
  0xb1   :  { %v80_v55 = vpop.permute.xlu0 %79  ;;  %1389 = vmatprep.mubr.msk.f32.mxu0 %vm121_vm1, %v1253_v50  ;;  %v83_v56 = vpop.permute.xlu1 %82  ;;  %1562 = vmatpush3.bf16.msra.mxu0 %v1878_v49 }
  0xb2   :  { %vm94_vm6 = vcmp.eq.s32.totalorder %v80_v55, %v65_v40  ;;  %vm95_vm7 = vcmp.eq.s32.totalorder %v83_v56, %v65_v40  ;;  %1563 = vmatprep.subr.bf16.mxu0 %v1742_v28 }
  0xb3   :  { %v1255_v58 = vsel %vm94_vm6, 1.0, %v1743_v45  ;;  %v1256_v59 = vsel %vm95_vm7, 1.0, %v1743_v45 }
  0xb4   :  { %1390 = vmatmul.mubr.msk.f32.gmra.mrb[2].mxu0 %vm121_vm1, %v1254_v54 }
  0xb5   :  { %1392 = vmatprep.mubr.msk.f32.mxu0 %vm121_vm1, %v1255_v58  ;;  %v86_v60 = vpop.permute.xlu0 %85  ;;  %1565 = vmatpush3.bf16.msra.mxu0 %v1886_v57  ;;  %v89_v62 = vpop.permute.xlu1 %88 }
  0xb6   :  { %vm96_vm8 = vcmp.eq.s32.totalorder %v86_v60, %v65_v40  ;;  %1566 = vmatprep.subr.bf16.mxu0 %v1742_v28  ;;  %vm97_vm9 = vcmp.eq.s32.totalorder %v89_v62, %v65_v40 }
  0xb7   :  { %v1257_v61 = vsel %vm96_vm8, 1.0, %v1743_v45  ;;  %v1258_v63 = vsel %vm97_vm9, 1.0, %v1743_v45 }
  0xb8   :  { %1393 = vmatmul.mubr.msk.f32.gmra.mrb[4].mxu0 %vm121_vm1, %v1256_v59 }
  0xb9   :  { %1395 = vmatprep.mubr.msk.f32.mxu0 %vm121_vm1, %v1257_v61 }
  0xbc   :  { %1396 = vmatmul.mubr.msk.f32.gmra.mrb[6].mxu0 %vm121_vm1, %v1258_v63 }
  0xbd   :  { %1444 = vmatprep.mubr.msk.f32.mxu0 %vm1744_vm11, %v1743_v45 }
  0xc0   :  { %1445 = vmatmul.mubr.f32.vlgmr.msra.gmra.mrb[8].mxu0 %v1743_v45 }
  0xc1   :  { %1568 = vmatpush3.bf16.msra.mxu0 %v1878_v49  ;;  %1455 = vmatprep.mubr.msk.f32.mxu0 %vm1744_vm11, %v1743_v45 }
  0xc2   :  { %1569 = vmatprep.subr.bf16.mxu0 %v1742_v28 }
  0xc5   :  { %1571 = vmatpush3.bf16.msra.mxu0 %v1886_v57 }
  0xc6   :  { %1578 = vmatprep.subr.bf16.mxu0 %v1742_v28 }
 0x183   :  { %v1388_v1 = vpop.f32.mrb[0].mxu0 }
 0x184   :  { %v216_v2 = vpop.f32.mrb[1].mxu0 }
 0x185   :  { %1424 = vmatprep.mubr.msk.f32.mxu1 %vm275_vm12, %v216_v2 }
 0x186   :  { %1425 = vmatmul.mubr.msk.f32.vlgmr.msra.gmra.mrb[0].mxu1 %vm275_vm12, %v1388_v1 }
 0x187   :  { %v1391_v3 = vpop.f32.mrb[2].mxu0  ;;  %1574 = vmatpush3.bf16.msra.mxu1 %v1878_v49 }
 0x188   :  { %v226_v4 = vpop.f32.mrb[3].mxu0  ;;  %1575 = vmatprep.subr.bf16.mxu1 %v1742_v28 }
 0x189   :  { %1427 = vmatprep.mubr.msk.f32.mxu1 %vm275_vm12, %v226_v4 }
 0x18a   :  { %1428 = vmatmul.mubr.msk.f32.gmra.mrb[2].mxu1 %vm275_vm12, %v1391_v3 }
 0x18b   :  { %v1394_v5 = vpop.f32.mrb[4].mxu0  ;;  %1577 = vmatpush3.bf16.msra.mxu1 %v1886_v57 }
 0x18c   :  { %v236_v6 = vpop.f32.mrb[5].mxu0  ;;  %1584 = vmatprep.subr.bf16.mxu1 %v1742_v28 }
 0x18d   :  { %1430 = vmatprep.mubr.msk.f32.mxu1 %vm275_vm12, %v236_v6 }
 0x18e   :  { %1431 = vmatmul.mubr.msk.f32.gmra.mrb[4].mxu1 %vm275_vm12, %v1394_v5 }
 0x18f   :  { %v1397_v7 = vpop.f32.mrb[6].mxu0 }
 0x190   :  { %v246_v8 = vpop.f32.mrb[7].mxu0 }
 0x191   :  { %1433 = vmatprep.mubr.msk.f32.mxu1 %vm275_vm12, %v246_v8 }
 0x192   :  { %1434 = vmatmul.mubr.msk.f32.gmra.mrb[6].mxu1 %vm275_vm12, %v1397_v7 }
 0x193   :  { %1466 = vmatprep.mubr.msk.f32.mxu1 %vm1744_vm11, %v1743_v45  ;;  %v483_v9 = vpop.f32.mrb[8].mxu0 }
 0x194   :  { %v1446_v10 = vpop.f32.mrb[9].mxu0 }
 0x259   :  { %v1426_v12 = vpop.f32.mrb[0].mxu1 }
 0x25a   :  { %v376_v13 = vadd.f32 %v1426_v12, %v1268_v11  ;;  %v370_v14 = vpop.f32.mrb[1].mxu1 }
 0x25b   :  { %v371_v15 = vadd.f32 %v1268_v11, %v370_v14 }
 0x25d   :  { %v487_v16 = vadd.f32 %v483_v9, %v371_v15  ;;  %v1429_v17 = vpop.f32.mrb[2].mxu1 }
 0x25e   :  { %v1930_v18 = vadd.f32 %v1429_v17, %v1268_v11  ;;  %v380_v19 = vpop.f32.mrb[3].mxu1 }
 0x25f   :  { %1621 = vtanh.f32 %v487_v16  ;;  %v1932_v20 = vadd.f32 %v1268_v11, %v380_v19  ;;  %v1278_v31 = vmul.f32 -1.442695, %v487_v16 }
 0x261   :  { %v1432_v21 = vpop.f32.mrb[4].mxu1  ;;  %1623 = vpow2.f32 %v1278_v31 }
 0x262   :  { %v1934_v22 = vadd.f32 %v1432_v21, %v1268_v11  ;;  %v390_v23 = vpop.f32.mrb[5].mxu1 }
 0x263   :  { %v1936_v24 = vadd.f32 %v1268_v11, %v390_v23 }
 0x265   :  { %v1435_v25 = vpop.f32.mrb[6].mxu1 }
 0x266   :  { %v1938_v26 = vadd.f32 %v1435_v25, %v1268_v11  ;;  %v400_v27 = vpop.f32.mrb[7].mxu1 }
 0x267   :  { %v1940_v29 = vadd.f32 %v1268_v11, %v400_v27 }
 0x269   :  { %v1622_v30 = vpop.eup %1621 }
 0x26a   :  { %497 = vrot.lane.b32.xlu0 %v1622_v30, %s1745_s4 }
 0x26b   :  { %v1624_v32 = vpop.eup %1623 }
 0x26c   :  { %v491_v33 = vadd.f32 1.0, %v1624_v32 }
 0x26e   :  { %1625 = vrcp.f32 %v491_v33 }
 0x278   :  { %v1626_v34 = vpop.eup %1625 }
 0x279   :  { %v495_v37 = vmul.f32 0.0, %v1626_v34 }
 0x2dc   :  { %v498_v35 = vpop.permute.xlu0 %497 }
 0x2dd   :  { %v500_v36 = vmul.f32 %v1626_v34, %v498_v35 }
 0x2df   :  { %502 = vrot.lane.b32.xlu1 %v500_v36, %s1746_s18 }
 0x351   :  { %v503_v38 = vpop.permute.xlu1 %502 }
 0x352   :  { %v505_v39 = vadd.f32 %v503_v38, %v495_v37 }
 0x354   :  { %1627 = vtanh.f32 %v505_v39 }
 0x35e   :  { %v1628_v40 = vpop.eup %1627 }
 0x35f   :  { %508 = vrot.lane.b32.xlu0 %v1628_v40, %s1745_s4 }
 0x3d1   :  { %v509_v41 = vpop.permute.xlu0 %508 }
 0x3d2   :  { %v511_v42 = vmul.f32 %v1626_v34, %v509_v41 }
 0x3d4   :  { %513 = vrot.lane.b32.xlu1 %v511_v42, %s1746_s18 }
 0x446   :  { %v514_v43 = vpop.permute.xlu1 %513 }
 0x447   :  { %1456 = vmatmul.mubr.msk.f32.vlgmr.msra.gmra.mrb[10].mxu0 %vm413_vm13, %v514_v43 }
 0x448   :  { %1580 = vmatpush3.bf16.msra.mxu0 %v1878_v49  ;;  %1477 = vmatprep.mubr.msk.f32.mxu0 %vm1744_vm11, %v1743_v45 }
 0x449   :  { %1581 = vmatprep.subr.bf16.mxu0 %v1742_v28 }
 0x44c   :  { %1583 = vmatpush3.bf16.msra.mxu0 %v1886_v57 }
 0x44d   :  { %1590 = vmatprep.subr.bf16.mxu0 %v1742_v28 }
 0x51a   :  { %v583_v44 = vpop.f32.mrb[10].mxu0 }
 0x51b   :  { %v587_v46 = vadd.f32 %v583_v44, %v376_v13  ;;  %v1457_v47 = vpop.f32.mrb[11].mxu0 }
 0x51d   :  { %1629 = vtanh.f32 %v587_v46  ;;  %v1280_v50 = vmul.f32 -1.442695, %v587_v46 }
 0x51f   :  { %1631 = vpow2.f32 %v1280_v50 }
 0x527   :  { %v1630_v48 = vpop.eup %1629 }
 0x528   :  { %597 = vrot.lane.b32.xlu0 %v1630_v48, %s1745_s4 }
 0x529   :  { %v1632_v51 = vpop.eup %1631 }
 0x52a   :  { %v591_v52 = vadd.f32 1.0, %v1632_v51 }
 0x52c   :  { %1633 = vrcp.f32 %v591_v52 }
 0x536   :  { %v1634_v53 = vpop.eup %1633 }
 0x537   :  { %v595_v56 = vmul.f32 %v1634_v53, %v505_v39 }
 0x59a   :  { %v598_v54 = vpop.permute.xlu0 %597 }
 0x59b   :  { %v600_v55 = vmul.f32 %v1634_v53, %v598_v54 }
 0x59d   :  { %602 = vrot.lane.b32.xlu1 %v600_v55, %s1746_s18 }
 0x60f   :  { %v603_v58 = vpop.permute.xlu1 %602 }
 0x610   :  { %v605_v59 = vadd.f32 %v603_v58, %v595_v56 }
 0x612   :  { %1635 = vtanh.f32 %v605_v59 }
 0x61c   :  { %v1636_v60 = vpop.eup %1635 }
 0x61d   :  { %608 = vrot.lane.b32.xlu0 %v1636_v60, %s1745_s4 }
 0x68f   :  { %v609_v61 = vpop.permute.xlu0 %608 }
 0x690   :  { %v611_v62 = vmul.f32 %v1634_v53, %v609_v61 }
 0x692   :  { %613 = vrot.lane.b32.xlu1 %v611_v62, %s1746_s18 }
 0x704   :  { %v614_v63 = vpop.permute.xlu1 %613 }
 0x705   :  { %1467 = vmatmul.mubr.msk.f32.vlgmr.msra.gmra.mrb[8].mxu1 %vm413_vm13, %v614_v63 }
 0x706   :  { %1586 = vmatpush3.bf16.msra.mxu1 %v1878_v49  ;;  %1488 = vmatprep.mubr.msk.f32.mxu1 %vm1744_vm11, %v1743_v45 }
 0x707   :  { %1587 = vmatprep.subr.bf16.mxu1 %v1742_v28 }
 0x70a   :  { %1589 = vmatpush3.bf16.msra.mxu1 %v1886_v57 }
 0x70b   :  { %1596 = vmatprep.subr.bf16.mxu1 %v1742_v28 }
 0x7d8   :  { %v683_v0 = vpop.f32.mrb[8].mxu1 }
 0x7d9   :  { %v687_v1 = vadd.f32 %v683_v0, %v1932_v20  ;;  %v1468_v2 = vpop.f32.mrb[9].mxu1 }
 0x7db   :  { %1637 = vtanh.f32 %v687_v1  ;;  %v1282_v4 = vmul.f32 -1.442695, %v687_v1 }
 0x7dd   :  { %1639 = vpow2.f32 %v1282_v4 }
 0x7e5   :  { %v1638_v3 = vpop.eup %1637 }
 0x7e6   :  { %697 = vrot.lane.b32.xlu0 %v1638_v3, %s1745_s4 }
 0x7e7   :  { %v1640_v5 = vpop.eup %1639 }
 0x7e8   :  { %v691_v6 = vadd.f32 1.0, %v1640_v5 }
 0x7ea   :  { %1641 = vrcp.f32 %v691_v6 }
 0x7f4   :  { %v1642_v7 = vpop.eup %1641 }
 0x7f5   :  { %v695_v10 = vmul.f32 %v1642_v7, %v605_v59 }
 0x858   :  { %v698_v8 = vpop.permute.xlu0 %697 }
 0x859   :  { %v700_v9 = vmul.f32 %v1642_v7, %v698_v8 }
 0x85b   :  { %702 = vrot.lane.b32.xlu1 %v700_v9, %s1746_s18 }
 0x8cd   :  { %v703_v11 = vpop.permute.xlu1 %702 }
 0x8ce   :  { %v705_v12 = vadd.f32 %v703_v11, %v695_v10 }
 0x8d0   :  { %1643 = vtanh.f32 %v705_v12 }
 0x8da   :  { %v1644_v13 = vpop.eup %1643 }
 0x8db   :  { %708 = vrot.lane.b32.xlu0 %v1644_v13, %s1745_s4 }
 0x94d   :  { %v709_v14 = vpop.permute.xlu0 %708 }
 0x94e   :  { %v711_v15 = vmul.f32 %v1642_v7, %v709_v14 }
 0x950   :  { %713 = vrot.lane.b32.xlu1 %v711_v15, %s1746_s18 }
 0x9c2   :  { %v714_v16 = vpop.permute.xlu1 %713 }
 0x9c3   :  { %1478 = vmatmul.mubr.msk.f32.vlgmr.msra.gmra.mrb[12].mxu0 %vm413_vm13, %v714_v16 }
 0x9c4   :  { %1592 = vmatpush3.bf16.msra.mxu0 %v1878_v49  ;;  %1499 = vmatprep.mubr.msk.f32.mxu0 %vm1744_vm11, %v1743_v45 }
 0x9c5   :  { %1593 = vmatprep.subr.bf16.mxu0 %v1742_v28 }
 0x9c8   :  { %1595 = vmatpush3.bf16.msra.mxu0 %v1886_v57 }
 0x9c9   :  { %1602 = vmatprep.subr.bf16.mxu0 %v1742_v28 }
 0xa96   :  { %v783_v17 = vpop.f32.mrb[12].mxu0 }
 0xa97   :  { %v787_v19 = vadd.f32 %v783_v17, %v1930_v18  ;;  %v1479_v20 = vpop.f32.mrb[13].mxu0 }
 0xa99   :  { %1645 = vtanh.f32 %v787_v19  ;;  %v1284_v23 = vmul.f32 -1.442695, %v787_v19 }
 0xa9b   :  { %1647 = vpow2.f32 %v1284_v23 }
 0xaa3   :  { %v1646_v21 = vpop.eup %1645 }
 0xaa4   :  { %797 = vrot.lane.b32.xlu0 %v1646_v21, %s1745_s4 }
 0xaa5   :  { %v1648_v25 = vpop.eup %1647 }
 0xaa6   :  { %v791_v27 = vadd.f32 1.0, %v1648_v25 }
 0xaa8   :  { %1649 = vrcp.f32 %v791_v27 }
 0xab2   :  { %v1650_v30 = vpop.eup %1649 }
 0xab3   :  { %v795_v33 = vmul.f32 %v1650_v30, %v705_v12 }
 0xb16   :  { %v798_v31 = vpop.permute.xlu0 %797 }
 0xb17   :  { %v800_v32 = vmul.f32 %v1650_v30, %v798_v31 }
 0xb19   :  { %802 = vrot.lane.b32.xlu1 %v800_v32, %s1746_s18 }
 0xb8b   :  { %v803_v34 = vpop.permute.xlu1 %802 }
 0xb8c   :  { %v805_v35 = vadd.f32 %v803_v34, %v795_v33 }
 0xb8e   :  { %1651 = vtanh.f32 %v805_v35 }
 0xb98   :  { %v1652_v18 = vpop.eup %1651 }
 0xb99   :  { %808 = vrot.lane.b32.xlu0 %v1652_v18, %s1745_s4 }
 0xc0b   :  { %v809_v36 = vpop.permute.xlu0 %808 }
 0xc0c   :  { %v811_v37 = vmul.f32 %v1650_v30, %v809_v36 }
 0xc0e   :  { %813 = vrot.lane.b32.xlu1 %v811_v37, %s1746_s18  ;;  %v1293_v37 = vld [vmem:[%s2027_s5] ss:$0 sm:$0xff] }
 0xc80   :  { %v814_v38 = vpop.permute.xlu1 %813 }
 0xc81   :  { %1489 = vmatmul.mubr.msk.f32.vlgmr.msra.gmra.mrb[10].mxu1 %vm413_vm13, %v814_v38 }
 0xc82   :  { %1598 = vmatpush3.bf16.msra.mxu1 %v1878_v49  ;;  %1510 = vmatprep.mubr.msk.f32.mxu1 %vm1744_vm11, %v1743_v45 }
 0xc83   :  { %1599 = vmatprep.subr.bf16.mxu1 %v1742_v28 }
 0xc86   :  { %1601 = vmatpush3.bf16.msra.mxu1 %v1886_v57 }
 0xd54   :  { %v883_v39 = vpop.f32.mrb[10].mxu1 }
 0xd55   :  { %v887_v40 = vadd.f32 %v883_v39, %v1936_v24  ;;  %v1490_v41 = vpop.f32.mrb[11].mxu1 }
 0xd57   :  { %1653 = vtanh.f32 %v887_v40  ;;  %v1286_v43 = vmul.f32 -1.442695, %v887_v40 }
 0xd59   :  { %1655 = vpow2.f32 %v1286_v43 }
 0xd61   :  { %v1654_v42 = vpop.eup %1653 }
 0xd62   :  { %897 = vrot.lane.b32.xlu0 %v1654_v42, %s1745_s4 }
 0xd63   :  { %v1656_v44 = vpop.eup %1655 }
 0xd64   :  { %v891_v46 = vadd.f32 1.0, %v1656_v44 }
 0xd66   :  { %1657 = vrcp.f32 %v891_v46 }
 0xd70   :  { %v1658_v47 = vpop.eup %1657 }
 0xd71   :  { %v895_v51 = vmul.f32 %v1658_v47, %v805_v35 }
 0xdd4   :  { %v898_v48 = vpop.permute.xlu0 %897 }
 0xdd5   :  { %v900_v50 = vmul.f32 %v1658_v47, %v898_v48  ;;  %v1294_v48 = vld [vmem:[#allocation2] ss:$0 sm:$0xff] }
 0xdd7   :  { %902 = vrot.lane.b32.xlu1 %v900_v50, %s1746_s18 }
 0xe49   :  { %v903_v52 = vpop.permute.xlu1 %902 }
 0xe4a   :  { %v905_v53 = vadd.f32 %v903_v52, %v895_v51 }
 0xe4c   :  { %1659 = vtanh.f32 %v905_v53 }
 0xe56   :  { %v1660_v24 = vpop.eup %1659 }
 0xe57   :  { %908 = vrot.lane.b32.xlu0 %v1660_v24, %s1745_s4 }
 0xec9   :  { %v909_v54 = vpop.permute.xlu0 %908 }
 0xeca   :  { %v911_v55 = vmul.f32 %v1658_v47, %v909_v54 }
 0xecc   :  { %913 = vrot.lane.b32.xlu1 %v911_v55, %s1746_s18 }
 0xf3e   :  { %v914_v56 = vpop.permute.xlu1 %913 }
 0xf3f   :  { %1500 = vmatmul.mubr.msk.f32.vlgmr.msra.gmra.mrb[14].mxu0 %vm413_vm13, %v914_v56 }
 0xf40   :  { %1604 = vmatpush3.bf16.msra.mxu0 %v1878_v49  ;;  %1521 = vmatprep.mubr.msk.f32.mxu0 %vm1744_vm11, %v1743_v45 }
 0xf41   :  { %1605 = vmatprep.subr.bf16.mxu0 %v1742_v28 }
 0xf44   :  { %1607 = vmatpush3.bf16.msra.mxu0 %v1886_v57 }
0x1012   :  { %v983_v58 = vpop.f32.mrb[14].mxu0 }
0x1013   :  { %v987_v59 = vadd.f32 %v983_v58, %v1934_v22  ;;  %v1501_v60 = vpop.f32.mrb[15].mxu0 }
0x1015   :  { %1661 = vtanh.f32 %v987_v59  ;;  %v1288_v62 = vmul.f32 -1.442695, %v987_v59 }
0x1017   :  { %1663 = vpow2.f32 %v1288_v62 }
0x101f   :  { %v1662_v61 = vpop.eup %1661 }
0x1020   :  { %997 = vrot.lane.b32.xlu0 %v1662_v61, %s1745_s4 }
0x1021   :  { %v1664_v63 = vpop.eup %1663 }
0x1022   :  { %v991_v0 = vadd.f32 1.0, %v1664_v63 }
0x1024   :  { %1665 = vrcp.f32 %v991_v0 }
0x102e   :  { %v1666_v49 = vpop.eup %1665 }
0x102f   :  { %v995_v28 = vmul.f32 %v1666_v49, %v905_v53 }
0x1092   :  { %v998_v1 = vpop.permute.xlu0 %997 }
0x1093   :  { %v1000_v45 = vmul.f32 %v1666_v49, %v998_v1 }
0x1095   :  { %1002 = vrot.lane.b32.xlu1 %v1000_v45, %s1746_s18 }
0x1107   :  { %v1003_v57 = vpop.permute.xlu1 %1002 }
0x1108   :  { %v1005_v2 = vadd.f32 %v1003_v57, %v995_v28 }
0x110a   :  { %1667 = vtanh.f32 %v1005_v2 }
0x1114   :  { %v1668_v22 = vpop.eup %1667 }
0x1115   :  { %1008 = vrot.lane.b32.xlu0 %v1668_v22, %s1745_s4 }
0x1187   :  { %v1009_v3 = vpop.permute.xlu0 %1008 }
0x1188   :  { %v1011_v4 = vmul.f32 %v1666_v49, %v1009_v3 }
0x118a   :  { %1013 = vrot.lane.b32.xlu1 %v1011_v4, %s1746_s18 }
0x11fc   :  { %v1014_v5 = vpop.permute.xlu1 %1013 }
0x11fd   :  { %1511 = vmatmul.mubr.msk.f32.vlgmr.msra.gmra.mrb[12].mxu1 %vm413_vm13, %v1014_v5 }
0x12d0   :  { %v1083_v6 = vpop.f32.mrb[12].mxu1 }
0x12d1   :  { %v1087_v7 = vadd.f32 %v1083_v6, %v1940_v29  ;;  %v1512_v8 = vpop.f32.mrb[13].mxu1 }
0x12d3   :  { %1669 = vtanh.f32 %v1087_v7  ;;  %v1290_v10 = vmul.f32 -1.442695, %v1087_v7 }
0x12d5   :  { %1671 = vpow2.f32 %v1290_v10 }
0x12dd   :  { %v1670_v9 = vpop.eup %1669 }
0x12de   :  { %1097 = vrot.lane.b32.xlu0 %v1670_v9, %s1745_s4 }
0x12df   :  { %v1672_v11 = vpop.eup %1671 }
0x12e0   :  { %v1091_v12 = vadd.f32 1.0, %v1672_v11 }
0x12e2   :  { %1673 = vrcp.f32 %v1091_v12 }
0x12ec   :  { %v1674_v13 = vpop.eup %1673 }
0x12ed   :  { %v1095_v16 = vmul.f32 %v1674_v13, %v1005_v2 }
0x1350   :  { %v1098_v14 = vpop.permute.xlu0 %1097 }
0x1351   :  { %v1100_v15 = vmul.f32 %v1674_v13, %v1098_v14 }
0x1353   :  { %1102 = vrot.lane.b32.xlu1 %v1100_v15, %s1746_s18 }
0x13c5   :  { %v1103_v17 = vpop.permute.xlu1 %1102 }
0x13c6   :  { %v1105_v19 = vadd.f32 %v1103_v17, %v1095_v16 }
0x13c8   :  { %1675 = vtanh.f32 %v1105_v19 }
0x13d2   :  { %v1676_v29 = vpop.eup %1675 }
0x13d3   :  { %1108 = vrot.lane.b32.xlu0 %v1676_v29, %s1745_s4 }
0x1445   :  { %v1109_v20 = vpop.permute.xlu0 %1108 }
0x1446   :  { %v1111_v21 = vmul.f32 %v1674_v13, %v1109_v20 }
0x1448   :  { %1113 = vrot.lane.b32.xlu1 %v1111_v21, %s1746_s18 }
0x14ba   :  { %v1114_v23 = vpop.permute.xlu1 %1113 }
0x14bb   :  { %1522 = vmatmul.mubr.msk.f32.vlgmr.msra.gmra.mrb[16].mxu0 %vm413_vm13, %v1114_v23 }
0x158e   :  { %v1183_v25 = vpop.f32.mrb[16].mxu0 }
0x158f   :  { %v1187_v27 = vadd.f32 %v1183_v25, %v1938_v26  ;;  %v1523_v30 = vpop.f32.mrb[17].mxu0 }
0x1591   :  { %1677 = vtanh.f32 %v1187_v27  ;;  %v1292_v32 = vmul.f32 -1.442695, %v1187_v27 }
0x1593   :  { %1679 = vpow2.f32 %v1292_v32 }
0x159b   :  { %v1678_v31 = vpop.eup %1677 }
0x159c   :  { %1197 = vrot.lane.b32.xlu0 %v1678_v31, %s1745_s4 }
0x159d   :  { %v1680_v33 = vpop.eup %1679 }
0x159e   :  { %v1191_v34 = vadd.f32 1.0, %v1680_v33 }
0x15a0   :  { %1681 = vrcp.f32 %v1191_v34 }
0x15aa   :  { %v1682_v35 = vpop.eup %1681 }
0x15ab   :  { %v1195_v26 = vmul.f32 %v1682_v35, %v1105_v19 }
0x160e   :  { %v1198_v18 = vpop.permute.xlu0 %1197 }
0x160f   :  { %v1200_v36 = vmul.f32 %v1682_v35, %v1198_v18 }
0x1611   :  { %1202 = vrot.lane.b32.xlu1 %v1200_v36, %s1746_s18 }
0x1615   :  { %1218 = vrot.lane.b32.xlu1 %v1293_v37, %s1747_s21 }
0x1683   :  { %v1203_v38 = vpop.permute.xlu1 %1202 }
0x1684   :  { %v1205_v39 = vadd.f32 %v1203_v38, %v1195_v26 }
0x1686   :  { %1683 = vtanh.f32 %v1205_v39 }
0x1687   :  { %v1219_v42 = vpop.permute.xlu1 %1218 }
0x1690   :  { %v1684_v40 = vpop.eup %1683 }
0x1691   :  { %1208 = vrot.lane.b32.xlu0 %v1684_v40, %s1745_s4 }
0x1703   :  { %v1209_v41 = vpop.permute.xlu0 %1208 }
0x1704   :  { %v1211_v43 = vmul.f32 %v1682_v35, %v1209_v41 }
0x1706   :  { %v1221_v44 = vmul.f32 %v1219_v42, %v1211_v43 }
0x1708   :  { %1223 = vrot.lane.b32.xlu0 %v1221_v44, %s1746_s18 }
0x177a   :  { %v1224_v46 = vpop.permute.xlu0 %1223 }
0x177b   :  { %v1226_v47 = vsel %vm413_vm13, %v1224_v46, 0.0 }
0x177c   :  { %1227 = vadd.xlane.f32.xlu1 %v1226_v47 }
0x1809   :  { %v1228_v50 = vpop.xlane.xlu1 %1227 }
0x180a   :  { %v1236_v51 = vadd.f32 %v1294_v48, %v1228_v50 }
0x180c   :  { %v1295_v52 = vmul.f32 -1.442695, %v1236_v51 }
0x180e   :  { %1685 = vpow2.f32 %v1295_v52 }
0x1818   :  { %v1686_v53 = vpop.eup %1685 }
0x1819   :  { %v1240_v24 = vadd.f32 1.0, %v1686_v53 }
0x181b   :  { %1687 = vrcp.f32 %v1240_v24 }
0x1825   :  { %v1688_v54 = vpop.eup %1687 }
0x1826   :  { %1244 = vst.msk [vmem:[%s2029_s7] sm:$0xff] %vm1243_vm14, %v1688_v54 }
0x1827   :  { %1249 = vsyncpa [#allocation4], 1 }
0x1828   :  { %1250 = vsyncpa [#allocation6], 1 }

</bundles_post_ra>
